<compile_context>
chip_gen: v7x
topology: tpu7x:2x2x1
jax: 0.10.0
libtpu: 0.0.40
codegen_flags: <defaults>
</compile_context>

<pallas_src>
import jax
import jax.numpy as jnp
from jax.experimental import pallas as pl
from jax.experimental.pallas import tpu as pltpu

HIDDEN = 128                      # fc1 output width, fixed by the PyTorch module.
_MIB = 1024 * 1024
_FAST_PATH_BYTES = 8 * _MIB       # fused, grid-less kernel below this feature size
_TILE_BYTES_CAP = 8 * _MIB        # per-feature-tile budget for the gridded path
_LANE = 128


def _sublane_multiple(dtype):
    # Sub-32-bit dtypes pack along sublanes: bf16 vreg = [16,128], int8/fp8 = [32,128].
    return max(8, 32 // jnp.dtype(dtype).itemsize)


def _vmem_limit_bytes():
    # Generation-aware scoped-VMEM budget: ~75% of physical VMEM, capped at 96 MiB.
    #   v5e/v6e (128 MiB physical) -> 96 MiB ; v7x (64 MiB per TC) -> 48 MiB.
    try:
        cap = pltpu.get_tpu_info().vmem_capacity_bytes
    except Exception:
        cap = 64 * _MIB           # conservative fallback (v7x per-TC size)
    return int(min(cap * 3 // 4, 96 * _MIB))


# ---------------------------------------------------------------------------
# Shared gate MLP body:  a = sigmoid(relu(coords @ W1 + b1) @ W2 + b2)
# fc1 (K = coord_size, tiny) -> K rank-1 VPU multiply-adds (no MXU padding
# waste); fc2 (K = 128) -> MXU dot with an f32 accumulator.
# ---------------------------------------------------------------------------
def _gate_mlp(coords, w1, b1, w2, b2):
    k_dim = w1.shape[0]
    h = b1.astype(jnp.float32)                       # (1, HIDDEN), broadcasts over B
    for k in range(k_dim):
        h = h + coords[:, k:k + 1].astype(jnp.float32) * w1[k:k + 1, :].astype(jnp.float32)
    h = jnp.maximum(h, 0.0)                          # (B, HIDDEN)
    a = jnp.dot(h, w2.astype(jnp.float32), preferred_element_type=jnp.float32)
    return jax.nn.sigmoid(a + b2.astype(jnp.float32))  # (B, C) f32


# ---------------------------------------------------------------------------
# Fast path: one fused, grid-less kernel (gate MLP + gating), features in VMEM.
# ---------------------------------------------------------------------------
def _fused_kernel(coords_ref, w1_ref, b1_ref, w2_ref, b2_ref, feat_ref, out_ref):
    gate = _gate_mlp(coords_ref[...], w1_ref[...], b1_ref[...],
                     w2_ref[...], b2_ref[...])                      # (B, C) f32
    out_ref[...] = (feat_ref[...] * gate[:, :, None]).astype(out_ref.dtype)


# ---------------------------------------------------------------------------
# Large path, kernel 1: one-shot gate (no grid).
# ---------------------------------------------------------------------------
def _gate_kernel(coords_ref, w1_ref, b1_ref, w2_ref, b2_ref, gate_ref):
    gate_ref[...] = _gate_mlp(coords_ref[...], w1_ref[...], b1_ref[...],
                              w2_ref[...], b2_ref[...])


def _compute_gate(coords, w1, b1_2d, w2, b2_2d):
    B = coords.shape[0]
    C = w2.shape[1]
    vmem = pl.BlockSpec(memory_space=pltpu.MemorySpace.VMEM)
    return pl.pallas_call(
        _gate_kernel,
        out_shape=jax.ShapeDtypeStruct((B, C), jnp.float32),
        in_specs=[vmem] * 5,
        out_specs=vmem,
    )(coords, w1, b1_2d, w2, b2_2d)


# ---------------------------------------------------------------------------
# Large path, kernel 2: gridded, lane-dense streaming multiply.
#   out[r, s] = feat[r, s] * gate[r]      (gate f32, product cast once)
# ---------------------------------------------------------------------------
def _gating_kernel(gate_ref, feat_ref, out_ref):
    out_ref[...] = (feat_ref[...] * gate_ref[...]).astype(out_ref.dtype)


def _apply_gate(feat2d, gate_col, tile_r, tile_s, vmem_limit):
    R, S = feat2d.shape
    grid = (pl.cdiv(R, tile_r), pl.cdiv(S, tile_s))   # masked edge blocks, no padding
    itemsize = jnp.dtype(feat2d.dtype).itemsize
    cost = pl.CostEstimate(
        flops=R * S,
        transcendentals=0,
        bytes_accessed=2 * R * S * itemsize + R * 4,
    )
    return pl.pallas_call(
        _gating_kernel,
        out_shape=jax.ShapeDtypeStruct((R, S), feat2d.dtype),
        grid=grid,
        in_specs=[
            pl.BlockSpec((tile_r, 1), lambda i, j: (i, 0)),
            pl.BlockSpec((tile_r, tile_s), lambda i, j: (i, j)),
        ],
        out_specs=pl.BlockSpec((tile_r, tile_s), lambda i, j: (i, j)),
        compiler_params=pltpu.CompilerParams(
            dimension_semantics=("parallel", "parallel"),
            vmem_limit_bytes=vmem_limit,
        ),
        cost_estimate=cost,
    )(gate_col, feat2d)


# ---------------------------------------------------------------------------
# Public wrapper.
# ---------------------------------------------------------------------------
def coord_attention(features, coords, w1, b1, w2, b2,
                    *, tile_rows=None, tile_lanes=None):
    """features: (B, C, D, H, W); coords: (B, coord_size).
    w1: (coord_size, 128), b1: (128,), w2: (128, C), b2: (C,)."""
    B, C, D, H, W = features.shape
    S = D * H * W
    R = B * C
    itemsize = jnp.dtype(features.dtype).itemsize
    feat_bytes = R * S * itemsize
    vmem_limit = _vmem_limit_bytes()

    b1_2d = b1.reshape(1, -1)
    b2_2d = b2.reshape(1, -1)

    # ---- small-problem fast path: one fused, grid-less kernel --------------
    if tile_rows is None and tile_lanes is None and feat_bytes <= _FAST_PATH_BYTES:
        vmem = pl.BlockSpec(memory_space=pltpu.MemorySpace.VMEM)
        out3d = pl.pallas_call(
            _fused_kernel,
            out_shape=jax.ShapeDtypeStruct((B, C, S), features.dtype),
            in_specs=[vmem] * 6,
            out_specs=vmem,
            compiler_params=pltpu.CompilerParams(vmem_limit_bytes=vmem_limit),
        )(coords, w1, b1_2d, w2, b2_2d, features.reshape(B, C, S))
        return out3d.reshape(B, C, D, H, W)

    # ---- large path: one-shot gate + gridded streaming multiply ------------
    gate = _compute_gate(coords, w1, b1_2d, w2, b2_2d)   # (B, C) f32
    gate_col = gate.reshape(R, 1)                        # stays f32 inside the multiply
    feat2d = features.reshape(R, S)                      # contiguous merge, no HBM copy

    # Budget-driven, dtype-aware tile selection.  ~4x tile bytes (in+out,
    # double-buffered) + tiny gate buffers must fit inside vmem_limit.
    sublane = _sublane_multiple(features.dtype)
    tile_budget = min(vmem_limit // 5, _TILE_BYTES_CAP)
    if tile_lanes is None:
        if S * itemsize * sublane <= tile_budget:
            tile_lanes = S                               # full rows: always layout-legal
        else:
            tile_lanes = (tile_budget // (sublane * itemsize)) // _LANE * _LANE
    if tile_rows is None:
        tile_rows = tile_budget // (max(tile_lanes, 1) * itemsize)

    # Normalize to layout-legal blocks: each block dim is either a multiple of
    # (sublane, 128) or spans the full array dim.
    tile_lanes = S if tile_lanes >= S else max(_LANE, (tile_lanes // _LANE) * _LANE)
    tile_rows = R if tile_rows >= R else max(sublane, (tile_rows // sublane) * sublane)
    # TODO(synk): if S < 128 on a large problem, a channels-last (lanes from
    # B*C) view would avoid masked stores; not needed for typical D*H*W >= 128.

    out2d = _apply_gate(feat2d, gate_col, tile_rows, tile_lanes, vmem_limit)
    return out2d.reshape(B, C, D, H, W)


def reference(features, coords, w1, b1, w2, b2):
    h = jnp.maximum(
        jnp.dot(coords, w1, precision=jax.lax.Precision.HIGHEST) + b1, 0.0)
    a = jax.nn.sigmoid(
        jnp.dot(h, w2, precision=jax.lax.Precision.HIGHEST) + b2)
    return features * a[:, :, None, None, None]


if __name__ == "__main__":
    # Small shapes consistent with the module's forward:
    #   features (B, feature_size, D, H, W), coords (B, coord_size=3).
    B, C, D, H, W = 2, 8, 4, 8, 8       # S = D*H*W = 256
    coord_size = 3

    key = jax.random.PRNGKey(0)
    k_feat, k_coord, k_w1, k_b1, k_w2, k_b2 = jax.random.split(key, 6)

    features = jax.random.normal(k_feat, (B, C, D, H, W), dtype=jnp.float32)
    coords = jax.random.normal(k_coord, (B, coord_size), dtype=jnp.float32)

    # Deterministic init (uniform +/- 1/sqrt(fan_in), like nn.Linear).
    lim1 = 1.0 / (coord_size ** 0.5)
    lim2 = 1.0 / (HIDDEN ** 0.5)
    w1 = jax.random.uniform(k_w1, (coord_size, HIDDEN), jnp.float32, -lim1, lim1)
    b1 = jax.random.uniform(k_b1, (HIDDEN,), jnp.float32, -lim1, lim1)
    w2 = jax.random.uniform(k_w2, (HIDDEN, C), jnp.float32, -lim2, lim2)
    b2 = jax.random.uniform(k_b2, (C,), jnp.float32, -lim2, lim2)

    ref = reference(features, coords, w1, b1, w2, b2)

    # Tolerance note: the in-kernel fc2 uses the MXU's f32 pass decomposition,
    # which can differ slightly from XLA's HIGHEST-precision dot.
    TOL = dict(atol=1e-3, rtol=1e-3)

    # 1) Default dispatch -> fused fast path (features fit in VMEM).
    out = jax.block_until_ready(coord_attention(features, coords, w1, b1, w2, b2))
    assert out.shape == (B, C, D, H, W)
    assert jnp.allclose(out, ref, **TOL)

    # 2) Explicit tiles -> gridded streaming path, exact tiling (grid (2, 2)).
    out2 = jax.block_until_ready(
        coord_attention(features, coords, w1, b1, w2, b2,
                        tile_rows=8, tile_lanes=128))
    assert jnp.allclose(out2, ref, **TOL)

    # 3) Ragged spatial dim (S = 288) -> gridded path with masked edge blocks.
    features_r = jax.random.normal(k_feat, (B, C, 4, 8, 9), dtype=jnp.float32)
    ref_r = reference(features_r, coords, w1, b1, w2, b2)
    out3 = jax.block_until_ready(
        coord_attention(features_r, coords, w1, b1, w2, b2,
                        tile_rows=8, tile_lanes=128))
    assert jnp.allclose(out3, ref_r, **TOL)

    print("KERNEL_OK")
</pallas_src>

<mosaic_0001>
module attributes {stable_mosaic.version = 11 : i64} {
  func.func @_fused_kernel(%arg0: memref<2x3xf32, #tpu.memory_space<vmem>>, %arg1: memref<3x128xf32, #tpu.memory_space<vmem>>, %arg2: memref<1x128xf32, #tpu.memory_space<vmem>>, %arg3: memref<128x8xf32, #tpu.memory_space<vmem>>, %arg4: memref<1x8xf32, #tpu.memory_space<vmem>>, %arg5: memref<2x8x256xf32, #tpu.memory_space<vmem>>, %arg6: memref<2x8x256xf32, #tpu.memory_space<vmem>>) attributes {dimension_semantics = [], scalar_prefetch = 0 : i64, scratch_operands = 0 : i64, tpu.core_type = #tpu.core_type<tc>} {
    %c0 = arith.constant 0 : index
    %c0_0 = arith.constant 0 : index
    %0 = vector.load %arg0[%c0, %c0_0] : memref<2x3xf32, #tpu.memory_space<vmem>>, vector<2x3xf32>
    %c0_1 = arith.constant 0 : index
    %c0_2 = arith.constant 0 : index
    %1 = vector.load %arg1[%c0_1, %c0_2] : memref<3x128xf32, #tpu.memory_space<vmem>>, vector<3x128xf32>
    %c0_3 = arith.constant 0 : index
    %c0_4 = arith.constant 0 : index
    %2 = vector.load %arg2[%c0_3, %c0_4] : memref<1x128xf32, #tpu.memory_space<vmem>>, vector<1x128xf32>
    %c0_5 = arith.constant 0 : index
    %c0_6 = arith.constant 0 : index
    %3 = vector.load %arg3[%c0_5, %c0_6] : memref<128x8xf32, #tpu.memory_space<vmem>>, vector<128x8xf32>
    %c0_7 = arith.constant 0 : index
    %c0_8 = arith.constant 0 : index
    %4 = vector.load %arg4[%c0_7, %c0_8] : memref<1x8xf32, #tpu.memory_space<vmem>>, vector<1x8xf32>
    %5 = vector.extract_strided_slice %0 {offsets = [0, 0], sizes = [2, 1], strides = [1, 1]} : vector<2x3xf32> to vector<2x1xf32>
    %6 = vector.extract_strided_slice %1 {offsets = [0, 0], sizes = [1, 128], strides = [1, 1]} : vector<3x128xf32> to vector<1x128xf32>
    %7 = vector.broadcast %5 : vector<2x1xf32> to vector<2x128xf32>
    %8 = vector.broadcast %6 : vector<1x128xf32> to vector<2x128xf32>
    %9 = arith.mulf %7, %8 : vector<2x128xf32>
    %10 = vector.broadcast %2 : vector<1x128xf32> to vector<2x128xf32>
    %11 = arith.addf %10, %9 : vector<2x128xf32>
    %12 = vector.extract_strided_slice %0 {offsets = [0, 1], sizes = [2, 1], strides = [1, 1]} : vector<2x3xf32> to vector<2x1xf32>
    %13 = vector.extract_strided_slice %1 {offsets = [1, 0], sizes = [1, 128], strides = [1, 1]} : vector<3x128xf32> to vector<1x128xf32>
    %14 = vector.broadcast %12 : vector<2x1xf32> to vector<2x128xf32>
    %15 = vector.broadcast %13 : vector<1x128xf32> to vector<2x128xf32>
    %16 = arith.mulf %14, %15 : vector<2x128xf32>
    %17 = arith.addf %11, %16 : vector<2x128xf32>
    %18 = vector.extract_strided_slice %0 {offsets = [0, 2], sizes = [2, 1], strides = [1, 1]} : vector<2x3xf32> to vector<2x1xf32>
    %19 = vector.extract_strided_slice %1 {offsets = [2, 0], sizes = [1, 128], strides = [1, 1]} : vector<3x128xf32> to vector<1x128xf32>
    %20 = vector.broadcast %18 : vector<2x1xf32> to vector<2x128xf32>
    %21 = vector.broadcast %19 : vector<1x128xf32> to vector<2x128xf32>
    %22 = arith.mulf %20, %21 : vector<2x128xf32>
    %23 = arith.addf %17, %22 : vector<2x128xf32>
    %cst = arith.constant 0.000000e+00 : f32
    %24 = vector.broadcast %cst : f32 to vector<2x128xf32>
    %25 = arith.maximumf %23, %24 : vector<2x128xf32>
    %cst_9 = arith.constant dense<0.000000e+00> : vector<2x8xf32>
    %26 = tpu.matmul %25, %3, %cst_9 {dimension_numbers = #tpu.dot_dimension_numbers<[1], [0], [0], [1], [0, 0, 1, 1], [], []>} : vector<2x128xf32>, vector<128x8xf32>, vector<2x8xf32> -> vector<2x8xf32>
    %27 = vector.broadcast %4 : vector<1x8xf32> to vector<2x8xf32>
    %28 = arith.addf %26, %27 : vector<2x8xf32>
    %29 = arith.negf %28 : vector<2x8xf32>
    %30 = math.exp %29 : vector<2x8xf32>
    %cst_10 = arith.constant 1.000000e+00 : f32
    %31 = vector.broadcast %cst_10 : f32 to vector<2x8xf32>
    %32 = arith.addf %31, %30 : vector<2x8xf32>
    %33 = arith.divf %31, %32 : vector<2x8xf32>
    %c0_11 = arith.constant 0 : index
    %c0_12 = arith.constant 0 : index
    %c0_13 = arith.constant 0 : index
    %34 = vector.load %arg5[%c0_11, %c0_12, %c0_13] : memref<2x8x256xf32, #tpu.memory_space<vmem>>, vector<2x8x256xf32>
    %35 = vector.shape_cast %33 : vector<2x8xf32> to vector<2x8x1xf32>
    %36 = vector.broadcast %35 : vector<2x8x1xf32> to vector<2x8x256xf32>
    %37 = arith.mulf %34, %36 : vector<2x8x256xf32>
    %c0_14 = arith.constant 0 : index
    %c0_15 = arith.constant 0 : index
    %c0_16 = arith.constant 0 : index
    %38 = vector.load %arg6[%c0_14, %c0_15, %c0_16] : memref<2x8x256xf32, #tpu.memory_space<vmem>>, vector<2x8x256xf32>
    tpu.vector_store %arg6[%c0_14, %c0_15, %c0_16], %37 {strides = array<i32>} : memref<2x8x256xf32, #tpu.memory_space<vmem>>, vector<2x8x256xf32>,
    return
  }
}

</mosaic_0001>

<bundles_post_ra>
// kernel: tpu_custom_call.1
= control target key start
LH: loop header
LB: loop body
LE: loop exit
PB: predicated region body
PF: predicated region fallthrough
CT: control target
= control target key end

     0   :  { %v326_v1 = vmov 0   ;;  %v327_v2 = vmov 2   ;;  %v328_v8 = vmov 0.0|0.0   ;;  %v329_v12 = vmov 1   ;;  %s454_s0 = inlined_call_operand.vmem [shape: f32[2,3], index: 0, kind: input, shape index: {}]   ;;  %s455_s1 = inlined_call_operand.vmem [shape: f32[3,128], index: 1, kind: input, shape index: {}]   ;;  %s456_s2 = inlined_call_operand.vmem [shape: f32[1,128], index: 2, kind: input, shape index: {}]   ;;  %s457_s3 = inlined_call_operand.vmem [shape: f32[128,8], index: 3, kind: input, shape index: {}]   ;;  %s458_s4 = inlined_call_operand.vmem [shape: f32[1,8], index: 4, kind: input, shape index: {}]   ;;  %s459_s5 = inlined_call_operand.vmem [shape: f32[2,8,256], index: 5, kind: input, shape index: {}]   ;;  %s460_s6 = inlined_call_operand.hbm [shape: f32[2,8,256], index: 6, kind: output, shape index: {}]  }
   0x1   :  { %v24_v0 = vld [vmem:[%s454_s0] sm:$0x3]  ;;  %294 = vset.pattern.permute.xlu0 %v326_v1  ;;  %296 = vset.pattern.permute.xlu1 %v327_v2  ;;  %v28_v4 = vld [vmem:[%s457_s3 + $0x8] sm:$0xff]  ;;  %v29_v5 = vld [vmem:[%s457_s3 + $0x10] sm:$0xff] }
   0x2   :  { %v27_v3 = vld [vmem:[%s457_s3] sm:$0xff]  ;;  %46 = vperm.xlu0 %294, %v24_v0   ;;  %72 = vperm.xlu1 %296, %v24_v0   ;;  %v30_v7 = vld [vmem:[%s457_s3 + $0x18] sm:$0xff]  ;;  %v32_v11 = vld [vmem:[%s457_s3 + $0x28] sm:$0xff] }
   0x3   :  { %v262_v6 = vpack.c.bf16 %v28_v4, %v27_v3  ;;  %261 = vmatprep.subr.bf16.mxu0 %v328_v8  ;;  %v265_v9 = vpack.c.bf16 %v30_v7, %v29_v5  ;;  %v31_v10 = vld [vmem:[%s457_s3 + $0x20] sm:$0xff] }
   0x5   :  { %263 = vmatpush3.bf16.msra.mxu0 %v262_v6 }
   0x6   :  { %264 = vmatprep.subr.bf16.mxu0 %v328_v8  ;;  %295 = vset.pattern.permute.xlu0 %v329_v12 }
   0x7   :  { %11 = vsyncpa [#allocation3], 0  ;;  %62 = vperm.xlu0 %295, %v24_v0   ;;  %v268_v13 = vpack.c.bf16 %v32_v11, %v31_v10  ;;  %v33_v14 = vld [vmem:[%s457_s3 + $0x30] sm:$0xff]  ;;  %v34_v15 = vld [vmem:[%s457_s3 + $0x38] sm:$0xff]  ;;  %vm330_vm0 = vmmov 0   ;;  %v331_v19 = vmov 0.0   ;;  %v49_v30 = vlaneseq }
   0x8   :  { %v271_v16 = vpack.c.bf16 %v34_v15, %v33_v14  ;;  %v35_v17 = vld [vmem:[%s457_s3 + $0x40] sm:$0xff]  ;;  %v36_v18 = vld [vmem:[%s457_s3 + $0x48] sm:$0xff]  ;;  %258 = vmatprep.mubr.msk.f32.mxu0 %vm330_vm0, %v331_v19  ;;  %v37_v21 = vld [vmem:[%s457_s3 + $0x50] sm:$0xff] }
   0x9   :  { %266 = vmatpush3.bf16.msra.mxu0 %v265_v9  ;;  %v274_v20 = vpack.c.bf16 %v36_v18, %v35_v17  ;;  %v38_v22 = vld [vmem:[%s457_s3 + $0x58] sm:$0xff]  ;;  %v39_v24 = vld [vmem:[%s457_s3 + $0x60] sm:$0xff]  ;;  %v40_v25 = vld [vmem:[%s457_s3 + $0x68] sm:$0xff]  ;;  %v50_v31 = vshrl.u32 %v49_v30, 7 }
   0xa   :  { %267 = vmatprep.subr.bf16.mxu0 %v328_v8  ;;  %v277_v23 = vpack.c.bf16 %v38_v22, %v37_v21  ;;  %v280_v26 = vpack.c.bf16 %v40_v25, %v39_v24  ;;  %v41_v27 = vld [vmem:[%s457_s3 + $0x70] sm:$0xff]  ;;  %v42_v28 = vld [vmem:[%s457_s3 + $0x78] sm:$0xff]  ;;  %v25_v33 = vld [vmem:[%s455_s1] sm:$0x7] }
   0xb   :  { %297 = vset.pattern.permute.xlu0 %v327_v2  ;;  %v283_v29 = vpack.c.bf16 %v42_v28, %v41_v27  ;;  %v51_v32 = vsub.s32 0, %v50_v31  ;;  %v67_v35 = vsub.s32 1, %v50_v31  ;;  %v77_v36 = vsub.s32 2, %v50_v31  ;;  %v206_v41 = vld [vmem:[%s456_s2] ss:$0 sm:$0xff]  ;;  %v165_v61 = vld [vmem:[%s459_s5 + $0x8] sm:$0xff] }
   0xc   :  { %v207_v50 = vld [vmem:[%s458_s4] ss:$0 sm:$0xff]  ;;  %s332_s4 = smov [#allocation2]   ;;  %v166_v1 = vld [vmem:[%s459_s5 + $0x10] sm:$0xff]  ;;  %v167_v2 = vld [vmem:[%s459_s5 + $0x18] sm:$0xff] }
   0xd   :  { %269 = vmatpush3.bf16.msra.mxu0 %v268_v13  ;;  %v52_v34 = vrot.slane %v25_v33, %v51_v32  ;;  %v68_v39 = vrot.slane %v25_v33, %v67_v35  ;;  %v78_v40 = vrot.slane %v25_v33, %v77_v36  ;;  %v164_v60 = vld [vmem:[%s459_s5] sm:$0xff]  ;;  %s195_s12 = sshll.u32 %s332_s4, 4  ;;  %s196_s12 = int_to_ptr.vmem [resolvable:$true] %s195_s12 }
   0xe   :  { %270 = vmatprep.subr.bf16.mxu0 %v328_v8  ;;  %s302_s17 = scalar_lea.vmem %s196_s12, 512  ;;  %p307_p1 = scmp.lt.s32.totalorder %s196_s12, %s196_s12 }
   0xf   :  { %p303_p0 = scmp.ne.s32.totalorder %s196_s12, %s302_s17  ;;  %p308_p2 = scmp.lt.s32.totalorder %s302_s17, %s302_s17 }
  0x11   :  { %272 = vmatpush3.bf16.msra.mxu0 %v271_v16  ;;  %p309_p3 = por %p308_p2, %p307_p1 }
  0x12   :  { %273 = vmatprep.subr.bf16.mxu0 %v328_v8 }
  0x13   :  { %p310_p4 = pnand %p309_p3, %p303_p0 }
  0x15   :  { %275 = vmatpush3.bf16.msra.mxu0 %v274_v20 }
  0x16   :  { %276 = vmatprep.subr.bf16.mxu0 %v328_v8 }
  0x19   :  { %278 = vmatpush3.bf16.msra.mxu0 %v277_v23 }
  0x1a   :  { %279 = vmatprep.subr.bf16.mxu0 %v328_v8 }
  0x1d   :  { %281 = vmatpush3.bf16.msra.mxu0 %v280_v26 }
  0x1e   :  { %282 = vmatprep.subr.bf16.mxu0 %v328_v8 }
  0x21   :  { %284 = vmatpush3.bf16.msra.mxu0 %v283_v29 }
  0x81   :  { %v47_v37 = vpop.permute.xlu0 %46  ;;  %v73_v42 = vpop.permute.xlu1 %72 }
  0x82   :  { %v53_v38 = vmul.f32 %v52_v34, %v47_v37  ;;  %v79_v46 = vmul.f32 %v78_v40, %v73_v42 }
  0x84   :  { %v60_v44 = vadd.f32 %v206_v41, %v53_v38 }
  0x86   :  { %v63_v43 = vpop.permute.xlu0 %62 }
  0x87   :  { %v69_v45 = vmul.f32 %v68_v39, %v63_v43 }
  0x89   :  { %v70_v47 = vadd.f32 %v69_v45, %v60_v44 }
  0x8b   :  { %v80_v48 = vadd.f32 %v79_v46, %v70_v47 }
  0x8d   :  { %v81_v49 = vmax.f32 %v80_v48, 0.0 }
  0x8f   :  { %259 = vmatmul.mubr.f32.vlgmr.msra.gmra.mrb[0].mxu0 %v81_v49 }
 0x162   :  { %v154_v51 = vpop.f32.mrb[0].mxu0 }
 0x163   :  { %v155_v52 = vadd.f32 %v207_v50, %v154_v51  ;;  %v260_v53 = vpop.f32.mrb[1].mxu0 }
 0x165   :  { %v208_v54 = vmul.f32 -1.442695, %v155_v52 }
 0x167   :  { %298 = vpow2.f32 %v208_v54 }
 0x171   :  { %v299_v55 = vpop.eup %298 }
 0x172   :  { %v161_v56 = vadd.f32 1.0, %v299_v55 }
 0x174   :  { %300 = vrcp.f32 %v161_v56 }
 0x17e   :  { %v301_v57 = vpop.eup %300 }
 0x17f   :  { %v171_v58 = vrot.slane %v301_v57, %v51_v32  ;;  %v178_v59 = vrot.slane %v301_v57, %v67_v35 }
 0x181   :  { %173 = vbcast.lane.b32.xlu1 %v171_v58, 256 }
 0x185   :  { %180 = vbcast.lane.b32.xlu1 %v178_v59, 256 }
 0x1f3   :  { %v174_v62 = vpop.permute.xlu1 %173 }
 0x1f4   :  { %v182_v63 = vmul.f32 %v174_v62, %v164_v60  ;;  %v183_v0 = vmul.f32 %v174_v62, %v165_v61 }
 0x1f6   :  { %186 = vst [vmem:[#allocation2] sm:$0xff] %v182_v63  ;;  %187 = vst [vmem:[#allocation2 + $0x8] sm:$0xff] %v183_v0 }
 0x1f7   :  { %v181_v3 = vpop.permute.xlu1 %180 }
 0x1f8   :  { %v184_v4 = vmul.f32 %v181_v3, %v166_v1  ;;  %v185_v5 = vmul.f32 %v181_v3, %v167_v2 }
 0x1fa   :  { %188 = vst [vmem:[#allocation2 + $0x10] sm:$0xff] %v184_v4  ;;  %189 = vst [vmem:[#allocation2 + $0x18] sm:$0xff] %v185_v5 }
 0x1fb   :  { %313 = shalt.err (!%p310_p4)
}
 0x1fc   :  { %s314_s20 = scalar_lea.hbm %s460_s6, 512 }
 0x1fd   :  { %p315_p5 = scmp.ne.s32.totalorder %s460_s6, %s314_s20  ;;  %p318_p6 = scmp.lt.u32.totalorder %s314_s20, %s460_s6 }
 0x1ff   :  { %p320_p7 = pnand %p318_p6, %p315_p5 }
 0x201   :  { %323 = shalt.err (!%p320_p7)
}
 0x202   :  { %s333_s24 = smov 256   ;;  %s334_s25 = smov 16  }
 0x203   :  { %201 = dma.vmem_to_hbm [thread:$0]  %s196_s12, 512, %s460_s6, [#allocation3], %s333_s24, %s333_s24, %s334_s25  }
 0x204   :  { %324 = dma.done.wait [#allocation3], 512  }
 0x205   :  { %325 = vsyncadd [#allocation3], 4294966784 }
 0x206   :  { %205 = vsyncpa [#allocation3], 1 }

</bundles_post_ra>
